<compile_context>
chip_gen: v7x
topology: tpu7x:2x2x1
jax: 0.10.0
libtpu: 0.0.40
codegen_flags: <defaults>
</compile_context>

<pallas_src>
import jax
import jax.numpy as jnp
from jax import lax
from jax.experimental import pallas as pl
from jax.experimental.pallas import tpu as pltpu


def _round_up(n, m):
    return ((n + m - 1) // m) * m


def _mlp_kernel(x_ref, w1t_ref, b1_ref, w2_ref, b2_ref, out_ref):
    # x:   (TB, D)   current batch tile
    # w1t: (H, D)    first-layer weight, transposed (resident in VMEM)
    # b1:  (H, 1)    first-layer bias as a column
    # w2:  (H, 1)    second-layer weight as a column
    # b2:  (1,)      second-layer bias, SMEM scalar
    # out: (1, TB)   lane-dense output slab for this tile
    x = x_ref[...]
    w1t = w1t_ref[...]

    # First linear, computed transposed on the MXU:
    #   h_t[h, b] = sum_d w1t[h, d] * x[b, d]     (i.e. W1^T @ x^T)
    # Keeps the batch on the lane axis -> everything downstream is lane-dense.
    h_t = lax.dot_general(
        w1t, x, (((1,), (1,)), ((), ())),
        preferred_element_type=jnp.float32,
    )                                              # (H, TB)

    # Bias (broadcast over lanes) + ReLU on the VPU.
    h_t = jnp.maximum(h_t + b1_ref[...], 0.0)

    # Dropout: identity in eval mode.

    # Second linear (H -> 1): VPU multiply by the w2 column + sublane reduce
    # (XLU) instead of an N=1 MXU matmul.
    y = jnp.sum(h_t * w2_ref[...], axis=0, keepdims=True)   # (1, TB)

    out_ref[...] = (y + b2_ref[0]).astype(out_ref.dtype)


def neural_net_regressor_forward(x, w1, b1, w2, b2, *, tb=1024):
    """Fused forward pass.

    x:  (B, D) float32
    w1: (D, H)  (transposed PyTorch layout), b1: (H,)
    w2: (H,),   b2: (1,)
    Returns the squeezed output like PyTorch `.squeeze()`.
    """
    B, D = x.shape
    H = w1.shape[1]

    # Tile the batch; pad to a multiple of the tile so blocks are aligned and
    # the per-tile output slab is lane-dense (TB is a multiple of 128).
    TB = min(int(tb), _round_up(max(B, 1), 128))
    B_pad = _round_up(B, TB)
    if B_pad != B:
        x = jnp.pad(x, ((0, B_pad - B), (0, 0)))

    # Tiny parameter reshapes (layout plumbing only).
    w1t = jnp.asarray(w1, jnp.float32).T.reshape(H, D)   # (H, D)
    b1c = jnp.asarray(b1, jnp.float32).reshape(H, 1)     # (H, 1)
    w2c = jnp.asarray(w2, jnp.float32).reshape(H, 1)     # (H, 1)
    b2s = jnp.asarray(b2, jnp.float32).reshape(1)        # (1,) -> SMEM

    grid = (B_pad // TB,)

    out = pl.pallas_call(
        _mlp_kernel,
        out_shape=jax.ShapeDtypeStruct((1, B_pad), jnp.float32),
        grid_spec=pltpu.PrefetchScalarGridSpec(
            num_scalar_prefetch=0,
            grid=grid,
            in_specs=[
                pl.BlockSpec((TB, D), lambda i: (i, 0)),   # x: streamed per tile
                pl.BlockSpec((H, D), lambda i: (0, 0)),    # w1^T: VMEM-resident
                pl.BlockSpec((H, 1), lambda i: (0, 0)),    # b1 column: resident
                pl.BlockSpec((H, 1), lambda i: (0, 0)),    # w2 column: resident
                pl.BlockSpec(memory_space=pltpu.MemorySpace.SMEM),  # b2 scalar
            ],
            out_specs=pl.BlockSpec((1, TB), lambda i: (0, i)),
        ),
        compiler_params=pltpu.CompilerParams(
            dimension_semantics=("parallel",),
        ),
    )(x, w1t, b1c, w2c, b2s)

    # Slice off the batch padding; PyTorch: self.model(x).squeeze()
    return jnp.squeeze(out[0, :B])


def init_params(key, input_dim, hidden_dim=16):
    """Deterministic parameter init (uniform, PyTorch-style fan_in bounds)."""
    k1, k2, k3, k4 = jax.random.split(key, 4)
    bound1 = 1.0 / jnp.sqrt(input_dim * 1.0)
    bound2 = 1.0 / jnp.sqrt(hidden_dim * 1.0)
    # w1 stored as (in, out) == transposed PyTorch weight layout.
    w1 = jax.random.uniform(k1, (input_dim, hidden_dim), jnp.float32, -bound1, bound1)
    b1 = jax.random.uniform(k2, (hidden_dim,), jnp.float32, -bound1, bound1)
    w2 = jax.random.uniform(k3, (hidden_dim,), jnp.float32, -bound2, bound2)
    b2 = jax.random.uniform(k4, (1,), jnp.float32, -bound2, bound2)
    return w1, b1, w2, b2


def _reference(x, w1, b1, w2, b2):
    h = jnp.maximum(x @ w1 + b1[None, :], 0.0)
    return jnp.squeeze(h @ w2.reshape(-1, 1) + b2)


if __name__ == "__main__":
    key = jax.random.PRNGKey(0)
    kx, kp, kx2 = jax.random.split(key, 3)

    batch = 8
    input_dim = 32
    hidden_dim = 16

    x = jax.random.normal(kx, (batch, input_dim), jnp.float32)
    w1, b1, w2, b2 = init_params(kp, input_dim, hidden_dim)

    # Small batch (single tile, padded to 128 rows).
    out = neural_net_regressor_forward(x, w1, b1, w2, b2)
    out = jax.block_until_ready(out)
    ref = _reference(x, w1, b1, w2, b2)
    assert out.shape == (batch,), out.shape
    assert jnp.allclose(out, ref, atol=1e-5, rtol=1e-5)

    # Larger, non-multiple batch exercising multiple grid tiles + padding.
    batch2 = 300
    x2 = jax.random.normal(kx2, (batch2, input_dim), jnp.float32)
    out2 = neural_net_regressor_forward(x2, w1, b1, w2, b2, tb=128)
    out2 = jax.block_until_ready(out2)
    ref2 = _reference(x2, w1, b1, w2, b2)
    assert out2.shape == (batch2,), out2.shape
    assert jnp.allclose(out2, ref2, atol=1e-5, rtol=1e-5)

    print("KERNEL_OK")
</pallas_src>

<mosaic_0001>
module attributes {stable_mosaic.version = 11 : i64} {
  func.func @_mlp_kernel(%arg0: i32, %arg1: memref<128x32xf32, #tpu.memory_space<vmem>>, %arg2: memref<16x32xf32, #tpu.memory_space<vmem>>, %arg3: memref<16x1xf32, #tpu.memory_space<vmem>>, %arg4: memref<16x1xf32, #tpu.memory_space<vmem>>, %arg5: memref<1xf32, #tpu.memory_space<smem>>, %arg6: memref<1x128xf32, #tpu.memory_space<vmem>>) attributes {dimension_semantics = [#tpu.dimension_semantics<parallel>], iteration_bounds = array<i64: 1>, scalar_prefetch = 0 : i64, scratch_operands = 0 : i64, tpu.core_type = #tpu.core_type<tc>, window_params = [{transform_indices = @transform_0, window_bounds = array<i64: 128, 32>}, {pipeline_mode = #tpu.pipeline_mode<synchronous>, transform_indices = @transform_1, window_bounds = array<i64: 16, 32>}, {pipeline_mode = #tpu.pipeline_mode<synchronous>, transform_indices = @transform_2, window_bounds = array<i64: 16, 1>}, {pipeline_mode = #tpu.pipeline_mode<synchronous>, transform_indices = @transform_3, window_bounds = array<i64: 16, 1>}, {transform_indices = @transform_4, window_bounds = array<i64: 1>}, {transform_indices = @transform_5, window_bounds = array<i64: 1, 128>}]} {
    %c0 = arith.constant 0 : index
    %c0_0 = arith.constant 0 : index
    %0 = vector.load %arg1[%c0, %c0_0] : memref<128x32xf32, #tpu.memory_space<vmem>>, vector<128x32xf32>
    %c0_1 = arith.constant 0 : index
    %c0_2 = arith.constant 0 : index
    %1 = vector.load %arg2[%c0_1, %c0_2] : memref<16x32xf32, #tpu.memory_space<vmem>>, vector<16x32xf32>
    %cst = arith.constant dense<0.000000e+00> : vector<16x128xf32>
    %2 = tpu.matmul %1, %0, %cst {dimension_numbers = #tpu.dot_dimension_numbers<[1], [1], [0], [0], [0, 0, 1, 0], [], []>} : vector<16x32xf32>, vector<128x32xf32>, vector<16x128xf32> -> vector<16x128xf32>
    %c0_3 = arith.constant 0 : index
    %c0_4 = arith.constant 0 : index
    %3 = vector.load %arg3[%c0_3, %c0_4] : memref<16x1xf32, #tpu.memory_space<vmem>>, vector<16x1xf32>
    %4 = vector.broadcast %3 : vector<16x1xf32> to vector<16x128xf32>
    %5 = arith.addf %2, %4 : vector<16x128xf32>
    %cst_5 = arith.constant 0.000000e+00 : f32
    %6 = vector.broadcast %cst_5 : f32 to vector<16x128xf32>
    %7 = arith.maximumf %5, %6 : vector<16x128xf32>
    %c0_6 = arith.constant 0 : index
    %c0_7 = arith.constant 0 : index
    %8 = vector.load %arg4[%c0_6, %c0_7] : memref<16x1xf32, #tpu.memory_space<vmem>>, vector<16x1xf32>
    %9 = vector.broadcast %8 : vector<16x1xf32> to vector<16x128xf32>
    %10 = arith.mulf %7, %9 : vector<16x128xf32>
    %cst_8 = arith.constant dense<0.000000e+00> : vector<128xf32>
    %11 = vector.multi_reduction <add>, %10, %cst_8 [0] : vector<16x128xf32> to vector<128xf32>
    %12 = vector.shape_cast %11 : vector<128xf32> to vector<1x128xf32>
    %c0_9 = arith.constant 0 : index
    %13 = memref.load %arg5[%c0_9] : memref<1xf32, #tpu.memory_space<smem>>
    %14 = vector.broadcast %13 : f32 to vector<1x128xf32>
    %15 = arith.addf %12, %14 : vector<1x128xf32>
    %c0_10 = arith.constant 0 : index
    %c0_11 = arith.constant 0 : index
    %16 = vector.load %arg6[%c0_10, %c0_11] : memref<1x128xf32, #tpu.memory_space<vmem>>, vector<1x128xf32>
    tpu.vector_store %arg6[%c0_10, %c0_11], %15 {strides = array<i32>} : memref<1x128xf32, #tpu.memory_space<vmem>>, vector<1x128xf32>,
    return
  }
  func.func @transform_0(%arg0: i32) -> (i32, i32) {
    %c0_i32 = arith.constant 0 : i32
    %c0_i32_0 = arith.constant 0 : i32
    return %arg0, %c0_i32 : i32, i32
  }
  func.func @transform_1(%arg0: i32) -> (i32, i32) {
    %c0_i32 = arith.constant 0 : i32
    %c0_i32_0 = arith.constant 0 : i32
    %c0_i32_1 = arith.constant 0 : i32
    return %c0_i32, %c0_i32_0 : i32, i32
  }
  func.func @transform_2(%arg0: i32) -> (i32, i32) {
    %c0_i32 = arith.constant 0 : i32
    %c0_i32_0 = arith.constant 0 : i32
    %c0_i32_1 = arith.constant 0 : i32
    return %c0_i32, %c0_i32_0 : i32, i32
  }
  func.func @transform_3(%arg0: i32) -> (i32, i32) {
    %c0_i32 = arith.constant 0 : i32
    %c0_i32_0 = arith.constant 0 : i32
    %c0_i32_1 = arith.constant 0 : i32
    return %c0_i32, %c0_i32_0 : i32, i32
  }
  func.func @transform_4(%arg0: i32) -> i32 {
    %c0_i32 = arith.constant 0 : i32
    %c0_i32_0 = arith.constant 0 : i32
    return %c0_i32 : i32
  }
  func.func @transform_5(%arg0: i32) -> (i32, i32) {
    %c0_i32 = arith.constant 0 : i32
    %c0_i32_0 = arith.constant 0 : i32
    return %c0_i32, %arg0 : i32, i32
  }
}

</mosaic_0001>

<bundles_post_ra>
// kernel: tpu_custom_call.1
= control target key start
LH: loop header
LB: loop body
LE: loop exit
PB: predicated region body
PF: predicated region fallthrough
CT: control target
= control target key end

     0   :  { %vm52_vm0 = vcmask 261120   ;;  %v370_v6 = vmov 0   ;;  %s523_s0 = inlined_call_operand.vmem [shape: f32[128,32], index: 0, kind: input, shape index: {}]   ;;  %s524_s1 = inlined_call_operand.vmem [shape: f32[16,32], index: 1, kind: input, shape index: {}]   ;;  %s525_s2 = inlined_call_operand.vmem [shape: f32[16,1], index: 2, kind: input, shape index: {}]   ;;  %s526_s3 = inlined_call_operand.vmem [shape: f32[16,1], index: 3, kind: input, shape index: {}]   ;;  %s527_s4 = inlined_call_operand.<no memory space> [shape: f32[1], index: 4, kind: input, shape index: {}]   ;;  %s528_s5 = inlined_call_operand.hbm [shape: f32[1,128], index: 5, kind: output, shape index: {}]  }
   0x1   :  { %v22_v0 = vld [vmem:[%s523_s0] sm:$0xff]  ;;  %v23_v1 = vld [vmem:[%s523_s0 + $0x8] sm:$0xff]  ;;  %v24_v2 = vld [vmem:[%s523_s0 + $0x10] sm:$0xff]  ;;  %344 = vset.pattern.permute.xlu0 %v370_v6  ;;  %345 = vset.pattern.permute.xlu1 %v370_v6 }
   0x2   :  { %v294_v3 = vpack.c.bf16 %v23_v1, %v22_v0  ;;  %vm413_vm1 = vmpackc.low %vm52_vm0, %vm52_vm0  ;;  %v25_v5 = vld [vmem:[%s523_s0 + $0x18] sm:$0xff]  ;;  %v26_v8 = vld [vmem:[%s523_s0 + $0x20] sm:$0xff] }
   0x3   :  { %v300_v7 = vpack.c.bf16 %v25_v5, %v24_v2  ;;  %v38_v9 = vld [vmem:[%s524_s1] sm:$0xff]  ;;  %v27_v10 = vld [vmem:[%s523_s0 + $0x28] sm:$0xff] }
   0x4   :  { %296 = vmatprep.subr.msk.bf16.mxu0 %vm413_vm1, %v294_v3  ;;  %291 = vmatprep.mubr.msk.f32.mxu0 %vm52_vm0, %v38_v9  ;;  %v40_v11 = vld [vmem:[%s525_s2] sm:$0xff] }
   0x5   :  { %299 = vmatpush3.bf16.xpose.msk.msra.mxu0 %vm413_vm1, %v294_v3  ;;  %v184_v12 = vld [vmem:[%s526_s3] sm:$0xff]  ;;  %44 = vperm.xlu0 %344, %v40_v11  }
   0x6   :  { %302 = vmatprep.subr.msk.bf16.mxu0 %vm413_vm1, %v300_v7  ;;  %188 = vperm.xlu1 %345, %v184_v12  }
   0x7   :  { %11 = vsyncpa [#allocation4], 0  ;;  %v41_v13 = vld [vmem:[%s525_s2 + $0x8] sm:$0xff]  ;;  %v306_v15 = vpack.c.bf16 %v27_v10, %v26_v8  ;;  %v28_v16 = vld [vmem:[%s523_s0 + $0x30] sm:$0xff]  ;;  %v206_v50 = vstv %s527_s4  ;;  %s371_s10 = smov [#allocation3]  }
   0x8   :  { %v185_v14 = vld [vmem:[%s526_s3 + $0x8] sm:$0xff]  ;;  %v29_v17 = vld [vmem:[%s523_s0 + $0x38] sm:$0xff]  ;;  %v30_v19 = vld [vmem:[%s523_s0 + $0x40] sm:$0xff]  ;;  %s215_s11 = sshll.u32 %s371_s10, 4  ;;  %s216_s11 = int_to_ptr.vmem [resolvable:$true] %s215_s11 }
   0x9   :  { %49 = vperm.xlu0 %344, %v41_v13   ;;  %v312_v18 = vpack.c.bf16 %v29_v17, %v28_v16  ;;  %v31_v20 = vld [vmem:[%s523_s0 + $0x48] sm:$0xff]  ;;  %v32_v22 = vld [vmem:[%s523_s0 + $0x50] sm:$0xff]  ;;  %v33_v23 = vld [vmem:[%s523_s0 + $0x58] sm:$0xff]  ;;  %s346_s12 = scalar_lea.vmem %s216_s11, 16  ;;  %s350_s13 = scalar_lea.vmem %s216_s11, 32 }
   0xa   :  { %193 = vperm.xlu1 %345, %v185_v14   ;;  %v318_v21 = vpack.c.bf16 %v31_v20, %v30_v19  ;;  %v324_v24 = vpack.c.bf16 %v33_v23, %v32_v22  ;;  %v34_v25 = vld [vmem:[%s523_s0 + $0x60] sm:$0xff]  ;;  %v35_v26 = vld [vmem:[%s523_s0 + $0x68] sm:$0xff]  ;;  %v36_v28 = vld [vmem:[%s523_s0 + $0x70] sm:$0xff]  ;;  %p347_p0 = scmp.ne.s32.totalorder %s216_s11, %s346_s12  ;;  %p351_p1 = scmp.lt.s32.totalorder %s216_s11, %s216_s11 }
   0xb   :  { %v330_v27 = vpack.c.bf16 %v35_v26, %v34_v25  ;;  %v37_v29 = vld [vmem:[%s523_s0 + $0x78] sm:$0xff]  ;;  %v39_v31 = vld [vmem:[%s524_s1 + $0x8] sm:$0xff]  ;;  %p352_p2 = scmp.lt.s32.totalorder %s350_s13, %s346_s12 }
   0xc   :  { %v336_v30 = vpack.c.bf16 %v37_v29, %v36_v28 }
   0xd   :  { %305 = vmatpush3.bf16.xpose.msk.msra.mxu0 %vm413_vm1, %v300_v7  ;;  %p353_p3 = por %p352_p2, %p351_p1 }
   0xe   :  { %308 = vmatprep.subr.msk.bf16.mxu0 %vm413_vm1, %v306_v15 }
   0xf   :  { %p354_p4 = pnand %p353_p3, %p347_p0 }
  0x15   :  { %311 = vmatpush3.bf16.xpose.msk.msra.mxu0 %vm413_vm1, %v306_v15 }
  0x16   :  { %314 = vmatprep.subr.msk.bf16.mxu0 %vm413_vm1, %v312_v18 }
  0x1d   :  { %317 = vmatpush3.bf16.xpose.msk.msra.mxu0 %vm413_vm1, %v312_v18 }
  0x1e   :  { %320 = vmatprep.subr.msk.bf16.mxu0 %vm413_vm1, %v318_v21 }
  0x25   :  { %323 = vmatpush3.bf16.xpose.msk.msra.mxu0 %vm413_vm1, %v318_v21 }
  0x26   :  { %326 = vmatprep.subr.msk.bf16.mxu0 %vm413_vm1, %v324_v24 }
  0x2d   :  { %329 = vmatpush3.bf16.xpose.msk.msra.mxu0 %vm413_vm1, %v324_v24 }
  0x2e   :  { %332 = vmatprep.subr.msk.bf16.mxu0 %vm413_vm1, %v330_v27 }
  0x35   :  { %335 = vmatpush3.bf16.xpose.msk.msra.mxu0 %vm413_vm1, %v330_v27 }
  0x36   :  { %338 = vmatprep.subr.msk.bf16.mxu0 %vm413_vm1, %v336_v30 }
  0x3d   :  { %341 = vmatpush3.bf16.xpose.msk.msra.mxu0 %vm413_vm1, %v336_v30 }
  0x44   :  { %292 = vmatmul.mubr.msk.f32.vlgmr.msra.gmra.mrb[0].mxu0 %vm52_vm0, %v39_v31 }
  0x84   :  { %v45_v32 = vpop.permute.xlu0 %44 }
  0x85   :  { %v189_v33 = vpop.permute.xlu1 %188 }
  0x88   :  { %v50_v34 = vpop.permute.xlu0 %49 }
  0x89   :  { %v194_v40 = vpop.permute.xlu1 %193 }
 0x117   :  { %v293_v35 = vpop.f32.mrb[0].mxu0 }
 0x118   :  { %v179_v36 = vadd.f32 %v293_v35, %v50_v34  ;;  %v173_v37 = vpop.f32.mrb[1].mxu0 }
 0x119   :  { %v174_v38 = vadd.f32 %v173_v37, %v45_v32 }
 0x11a   :  { %v183_v39 = vmax.f32 %v179_v36, 0.0 }
 0x11b   :  { %v182_v41 = vmax.f32 %v174_v38, 0.0 }
 0x11c   :  { %v197_v42 = vmul.f32 %v194_v40, %v183_v39 }
 0x11d   :  { %v196_v43 = vmul.f32 %v189_v33, %v182_v41 }
 0x11f   :  { %v198_v44 = vadd.f32 %v197_v42, %v196_v43 }
 0x121   :  { %v199_v45 = vrot.slane %v198_v44, 4 }
 0x123   :  { %v200_v46 = vadd.f32 %v199_v45, %v198_v44 }
 0x125   :  { %v201_v47 = vrot.slane %v200_v46, 2 }
 0x127   :  { %v202_v48 = vadd.f32 %v201_v47, %v200_v46 }
 0x129   :  { %v203_v49 = vrot.slane %v202_v48, 1 }
 0x12b   :  { %v204_v51 = vadd.f32 %v203_v49, %v202_v48 }
 0x12d   :  { %v207_v52 = vadd.f32 %v206_v50, %v204_v51 }
 0x12f   :  { %208 = vst [vmem:[#allocation3] sm:$0x1] %v207_v52 }
 0x130   :  { %357 = shalt.err (!%p354_p4)
}
 0x131   :  { %s358_s16 = scalar_lea.hbm %s528_s5, 16 }
 0x132   :  { %p359_p5 = scmp.ne.s32.totalorder %s528_s5, %s358_s16  ;;  %p362_p6 = scmp.lt.u32.totalorder %s358_s16, %s528_s5 }
 0x134   :  { %p364_p7 = pnand %p362_p6, %p359_p5 }
 0x136   :  { %367 = shalt.err (!%p364_p7)
}
 0x137   :  { %218 = dma.vmem_to_hbm [thread:$0]  %s216_s11, 16, %s528_s5, [#allocation4]  }
 0x138   :  { %368 = dma.done.wait [#allocation4], 16  }
 0x139   :  { %369 = vsyncadd [#allocation4], 4294967280 }
 0x13a   :  { %222 = vsyncpa [#allocation4], 1 }

</bundles_post_ra>
